<compile_context>
chip_gen: v5e
topology: v5e:2x2
jax: 0.10.0
libtpu: 0.0.40
codegen_flags: <defaults>
</compile_context>

<pallas_src>
import functools
import math

import jax
import jax.numpy as jnp
import numpy as np
from jax.experimental import pallas as pl
from jax.experimental.pallas import tpu as pltpu


def _pick_block_rows(total_rows, bytes_per_row,
                     vmem_budget_bytes=8 << 20, max_rows=4096):
    """Largest multiple-of-8 divisor of total_rows fitting the VMEM budget."""
    cap = vmem_budget_bytes // max(1, 2 * bytes_per_row)  # 2x for double buffering
    cap = int(max(1, min(cap, max_rows, total_rows)))
    if total_rows % 8 != 0:
        # Block must be a multiple of 8 or the full extent; use full extent.
        return total_rows
    if cap >= total_rows:
        return total_rows
    m = max(8, (cap // 8) * 8)
    while total_rows % m != 0:
        m -= 8
    return m


def _make_upsample_kernel(W, W_out, s_h):
    def kernel(x_ref, o_ref):
        xb = x_ref[...]                                           # (m_blk, W)
        # Build the 0/1 width-selection matrix in-kernel (no HBM streaming).
        # rwt[w, j] = 1  iff  (j*W)//W_out == w  iff  w*W_out <= j*W < (w+1)*W_out
        w_idx = jax.lax.broadcasted_iota(jnp.int32, (W, W_out), 0)
        j_idx = jax.lax.broadcasted_iota(jnp.int32, (W, W_out), 1)
        jw = j_idx * W
        lo = w_idx * W_out
        sel = jnp.logical_and(lo <= jw, jw < lo + W_out)
        rwt = sel.astype(xb.dtype)                                # exact 0/1
        y = jnp.dot(xb, rwt, preferred_element_type=jnp.float32)  # (m_blk, W_out)
        if s_h > 1:
            # Row replication folded into the lane axis of the grouped output view.
            y = jnp.concatenate([y] * s_h, axis=-1)               # (m_blk, s_h*W_out)
        o_ref[...] = y.astype(o_ref.dtype)

    return kernel


@functools.partial(jax.jit, static_argnames=("scale_factor", "mode"))
def upsample(x, *, scale_factor, mode="nearest"):
    if mode != "nearest":
        raise NotImplementedError("only mode='nearest' is implemented")
        # TODO(synk): bilinear/bicubic/nearest-exact modes not implemented.

    B, C, H, W = x.shape
    if isinstance(scale_factor, (tuple, list)):
        sh, sw = scale_factor
    else:
        sh = sw = scale_factor
    H_out = int(math.floor(H * float(sh)))
    W_out = int(math.floor(W * float(sw)))

    orig_dtype = x.dtype
    is_float = jnp.issubdtype(orig_dtype, jnp.floating)
    if not is_float:
        # TODO(synk): integer inputs go through f32 selection (exact below 2**24).
        x = x.astype(jnp.float32)

    # Height handling: integer scale -> fold into lane tiling; otherwise exact
    # wrapper-side row gather (legacy 'nearest': src = floor(dst*in/out)).
    if H_out % H == 0 and H_out >= H:
        s_h = H_out // H
        H_eff = H
        x_rows = x
    else:
        rows = jnp.asarray((np.arange(H_out) * H) // H_out, dtype=jnp.int32)
        x_rows = x[:, :, rows, :]
        s_h = 1
        H_eff = H_out

    R = C * H_eff                              # fused channel*row dimension
    x2 = x_rows.reshape(B, R, W)               # contiguous view
    out_w = s_h * W_out
    itemsize = x2.dtype.itemsize

    m_blk = _pick_block_rows(R, (W + out_w) * itemsize)
    grid = (B, R // m_blk)

    kernel = _make_upsample_kernel(W, W_out, s_h)

    out2 = pl.pallas_call(
        kernel,
        out_shape=jax.ShapeDtypeStruct((B, R, out_w), x2.dtype),
        grid_spec=pltpu.PrefetchScalarGridSpec(
            num_scalar_prefetch=0,
            grid=grid,
            in_specs=[pl.BlockSpec((None, m_blk, W), lambda b, r: (b, r, 0))],
            out_specs=pl.BlockSpec((None, m_blk, out_w), lambda b, r: (b, r, 0)),
        ),
        compiler_params=pltpu.CompilerParams(
            dimension_semantics=("parallel", "parallel")
        ),
        cost_estimate=pl.CostEstimate(
            flops=2 * B * R * W * W_out,
            transcendentals=0,
            bytes_accessed=B * R * (W + out_w) * itemsize,
        ),
    )(x2)

    out = out2.reshape(B, C, H_out, W_out)     # contiguous, free view
    if not is_float:
        out = out.astype(orig_dtype)
    return out


def _reference_nearest(x, scale_factor):
    # Pure-JAX reference (same semantics as legacy F.interpolate nearest).
    B, C, H, W = x.shape
    H_out = int(math.floor(H * float(scale_factor)))
    W_out = int(math.floor(W * float(scale_factor)))
    rows = (np.arange(H_out) * H) // H_out
    cols = (np.arange(W_out) * W) // W_out
    return x[:, :, rows][:, :, :, cols]


if __name__ == "__main__":
    key = jax.random.PRNGKey(0)
    B, C, H, W = 2, 4, 16, 16
    scale = 2
    x = jax.random.normal(key, (B, C, H, W), dtype=jnp.float32)

    out = upsample(x, scale_factor=scale, mode="nearest")
    out = jax.block_until_ready(out)

    ref = _reference_nearest(x, scale)
    assert out.shape == (B, C, H * scale, W * scale), out.shape
    np.testing.assert_allclose(np.asarray(out), np.asarray(ref), rtol=1e-6, atol=1e-6)

    print("KERNEL_OK")
</pallas_src>

<mosaic_0001>
module attributes {stable_mosaic.version = 11 : i64} {
  func.func @kernel(%arg0: i32, %arg1: i32, %arg2: memref<1x64x16xf32, #tpu.memory_space<vmem>>, %arg3: memref<1x64x64xf32, #tpu.memory_space<vmem>>) attributes {dimension_semantics = [#tpu.dimension_semantics<parallel>, #tpu.dimension_semantics<parallel>], iteration_bounds = array<i64: 2, 1>, scalar_prefetch = 0 : i64, scratch_operands = 0 : i64, tpu.core_type = #tpu.core_type<tc>, window_params = [{transform_indices = @transform_0, window_bounds = array<i64: 1, 64, 16>}, {transform_indices = @transform_1, window_bounds = array<i64: 1, 64, 64>}]} {
    %c0 = arith.constant 0 : index
    %c0_0 = arith.constant 0 : index
    %c0_1 = arith.constant 0 : index
    %0 = vector.load %arg2[%c0, %c0_0, %c0_1] : memref<1x64x16xf32, #tpu.memory_space<vmem>>, vector<1x64x16xf32>
    %1 = vector.shape_cast %0 : vector<1x64x16xf32> to vector<64x16xf32>
    %2 = tpu.iota {dimensions = array<i32: 0>} : vector<16x32xi32>
    %3 = tpu.iota {dimensions = array<i32: 1>} : vector<16x32xi32>
    %c16_i32 = arith.constant 16 : i32
    %4 = vector.broadcast %c16_i32 : i32 to vector<16x32xi32>
    %5 = arith.muli %3, %4 : vector<16x32xi32>
    %c32_i32 = arith.constant 32 : i32
    %6 = vector.broadcast %c32_i32 : i32 to vector<16x32xi32>
    %7 = arith.muli %2, %6 : vector<16x32xi32>
    %8 = arith.cmpi sle, %7, %5 : vector<16x32xi32>
    %c32_i32_2 = arith.constant 32 : i32
    %9 = vector.broadcast %c32_i32_2 : i32 to vector<16x32xi32>
    %10 = arith.addi %7, %9 : vector<16x32xi32>
    %11 = arith.cmpi slt, %5, %10 : vector<16x32xi32>
    %12 = arith.andi %8, %11 : vector<16x32xi1>
    %13 = arith.extui %12 : vector<16x32xi1> to vector<16x32xi32>
    %14 = arith.sitofp %13 : vector<16x32xi32> to vector<16x32xf32>
    %cst = arith.constant dense<0.000000e+00> : vector<64x32xf32>
    %15 = tpu.matmul %1, %14, %cst {dimension_numbers = #tpu.dot_dimension_numbers<[1], [0], [0], [1], [0, 0, 1, 1], [], []>} : vector<64x16xf32>, vector<16x32xf32>, vector<64x32xf32> -> vector<64x32xf32>
    %16 = tpu.concatenate %15, %15 in 1 : vector<64x32xf32>, vector<64x32xf32> -> vector<64x64xf32>
    %c0_3 = arith.constant 0 : index
    %c0_4 = arith.constant 0 : index
    %c0_5 = arith.constant 0 : index
    %17 = vector.load %arg3[%c0_3, %c0_4, %c0_5] : memref<1x64x64xf32, #tpu.memory_space<vmem>>, vector<1x64x64xf32>
    %18 = vector.shape_cast %17 : vector<1x64x64xf32> to vector<64x64xf32>
    %19 = vector.shape_cast %16 : vector<64x64xf32> to vector<1x64x64xf32>
    tpu.vector_store %arg3[%c0_3, %c0_4, %c0_5], %19 {strides = array<i32>} : memref<1x64x64xf32, #tpu.memory_space<vmem>>, vector<1x64x64xf32>,
    return
  }
  func.func @transform_0(%arg0: i32, %arg1: i32) -> (i32, i32, i32) {
    %c0_i32 = arith.constant 0 : i32
    %c0_i32_0 = arith.constant 0 : i32
    return %arg0, %arg1, %c0_i32 : i32, i32, i32
  }
  func.func @transform_1(%arg0: i32, %arg1: i32) -> (i32, i32, i32) {
    %c0_i32 = arith.constant 0 : i32
    %c0_i32_0 = arith.constant 0 : i32
    return %arg0, %arg1, %c0_i32 : i32, i32, i32
  }
}

</mosaic_0001>

<bundles_post_ra>
// kernel: upsample.1
= control target key start
LH: loop header
LB: loop body
LE: loop exit
PB: predicated region body
PF: predicated region fallthrough
CT: control target
= control target key end

     0   :  { %6 = vsyncpa [#allocation3], 0  ;;  %s728_s0 = inlined_call_operand.hbm [shape: f32[2,64,16], index: 0, kind: input, shape index: {}]   ;;  %s729_s1 = inlined_call_operand.vmem [shape: f32[2,64,64], index: 1, kind: output, shape index: {}]  }
   0x1   :  { %8 = vsyncpa [#allocation3 + $0x1], 0  ;;  %s594_s6 = smov 0   ;;  %s596_s7 = smov 0  }
   0x2   :  { %s598_s8 = smov 0   ;;  %s600_s9 = smov 0  }
   0x3   :  { %s602_s10 = smov 0   ;;  %s604_s11 = smov 0  }
   0x4 LB: > { %s406_s12 = sadd.s32 4294967295, %s578_s11   ;;  %s26_s13 = sadd.s32 1, %s574_s10  ;;  %s578_s11 = sphi %s604_s11, %s14_s11   ;;  %s574_s10 = sphi %s602_s10, %s738_s10   ;;  %s570_s9 = sphi %s600_s9, %s737_s9   ;;  %s566_s8 = sphi %s598_s8, %s736_s8   ;;  %s562_s7 = sphi %s596_s7, %s735_s7   ;;  %s558_s6 = sphi %s594_s6, %s734_s6  }
   0x5   : > { %p28_p0 = scmp.ge.s32.totalorder %s26_s13, 2  ;;  %s35_s14 = sadd.s32 1, %s566_s8 }
   0x6   : > { %p42_p1 = scmp.ne.s32.totalorder %s566_s8, %s562_s7  ;;  %p43_p2 = scmp.eq.s32.totalorder %s578_s11, 0 }
   0x7   : > { %s740_s13 = smov (%p28_p0, %s26_s13), 0  ;;  %p48_p4 = scmp.ne.s32.totalorder %s562_s7, %s558_s6 }
   0x8   : > { %p630_p3 = por %p43_p2, %p42_p1  ;;  %s30_s16 = ssub.s32 %s574_s10, %s740_s13 }
   0x9   : > { %p49_p5 = scmp.eq.s32.totalorder %s406_s12, 0  ;;  %p33_p6 = scmp.eq.s32.totalorder %s30_s16, 0 }
   0xa   : > { %p445_p8 = scmp.lt.s32.totalorder %s578_s11, 2  ;;  %s100_s19 = sand.u32 1, %s566_s8  }
   0xb   : > { %p637_p7 = por %p49_p5, %p48_p4  ;;  %s431_s20 = sshll.u32 %s574_s10, 6 }
   0xc   : > { %s643_s18 = scalar_select %p33_p6, %s566_s8, %s35_s14  }
   0xd   : > { %s410_s21 = sshll.u32 %s100_s19, 6  ;;  %s111_s24 = scalar_lea.hbm %s728_s0, %s431_s20 }
   0xe   : > { %s112_s25 = sshll.u32 %s111_s24, 4  ;;  %s104_s26 = scalar_lea.vmem [#allocation2], %s410_s21  ;;  %s113_s25 = int_to_ptr.hbm [resolvable:$true] %s112_s25 }
   0xf   : > { %s114_s27 = sshll.u32 %s104_s26, 4  ;;  %p442_p9 = pnand %p445_p8, %p630_p3  ;;  %s115_s27 = int_to_ptr.vmem [resolvable:$true] %s114_s27 }
  0x10   : > { %p413_p10 = scmp.ge.s32.totalorder %s578_s11, 1  ;;  %p122_p11 = scmp.lt.s32.totalorder %s578_s11, 3 }
  0x11   : > { %s101_s28 = scalar_lea.sflag [#allocation3], %s100_s19  ;;  %s580_s29 = smov 128  }
  0x12   : > { %s581_s30 = smov 8   ;;  %p123_p12 = pnand %p413_p10, %p122_p11 }
  0x13   : > { %444 = dma.hbm_to_vmem [thread:$0]  (!%p442_p9), %s113_s25, 1024, %s115_s27, %s101_s28, %s580_s29, %s580_s29, %s581_s30  }
  0x14   : > { %126 = sbr.rel (%p123_p12) target bundleno = 301 (0x12d), region = 24  ;;  %s128_s2 = sand.u32 (!%p123_p12), 1, %s562_s7  }
  0x15   : > { %s414_s3 = sshll.u32 (!%p123_p12), %s128_s2, 6  ;;  %s129_s4 = scalar_lea.sflag (!%p123_p12), [#allocation3], %s128_s2 }
  0x16   : > { %s655_s5 = scalar_lea.vmem (!%p123_p12), [#allocation2], %s414_s3 }
  0x19   : > { %553 = dma.done.wait (%p637_p7), %s129_s4, 1024  }
  0x1a   : > { %555 = vsyncadd (%p637_p7), %s129_s4, 4294966272  ;;  %v175_v0 = vlaneseq  ;;  %v582_v10 = vmov 1.0   ;;  %v167_v11 = vld [vmem:[%s655_s5] sm:$0xff]  ;;  %vm195_vm6 = vcmask 130048   ;;  %v169_v12 = vld [vmem:[%s655_s5 + $0x10] sm:$0xff]  ;;  %s583_s6 = smov 32  }
  0x1b   : > { %v171_v13 = vld [vmem:[%s655_s5 + $0x20] sm:$0xff]  ;;  %v173_v14 = vld [vmem:[%s655_s5 + $0x30] sm:$0xff]  ;;  %v168_v15 = vld [vmem:[%s655_s5 + $0x8] sm:$0xff]  ;;  %p158_p13 = scmp.lt.s32.totalorder %s570_s9, 1  ;;  %vm293_vm7 = vcmask 261120   ;;  %vm302_vm8 = vcmask 523264  }
  0x1c   : > { %v176_v1 = vshrl.u32 %v175_v0, 7  ;;  %v179_v2 = vand.u32 127, %v175_v0  ;;  %v170_v16 = vld [vmem:[%s655_s5 + $0x18] sm:$0xff]  ;;  %v172_v17 = vld [vmem:[%s655_s5 + $0x28] sm:$0xff] }
  0x1d   : > { %v174_v18 = vld [vmem:[%s655_s5 + $0x38] sm:$0xff]  ;;  %s742_s9 = smov (!%p158_p13, %s570_s9), 1 }
  0x1e   : > { %v177_v3 = vadd.s32 8, %v176_v1  ;;  %v180_v4 = vmul.u32 16, %v179_v2  ;;  %v181_v5 = vmul.u32 32, %v176_v1  ;;  %s432_s12 = sshll.u32 %s742_s9, 6 }
  0x1f   : > { %s165_s16 = scalar_lea.vmem %s729_s1, %s432_s12 }
  0x20   : > { %v182_v6 = vmul.u32 32, %v177_v3  ;;  %v185_v7 = vadd.s32 32, %v181_v5  ;;  %vm183_vm0 = vcmp.le.s32.totalorder %v181_v5, %v180_v4 }
  0x22   : > { %vm184_vm1 = vcmp.le.s32.totalorder %v182_v6, %v180_v4  ;;  %v186_v8 = vadd.s32 32, %v182_v6  ;;  %vm187_vm2 = vcmp.lt.s32.totalorder %v180_v4, %v185_v7 }
  0x23   : > { %vm661_vm4 = vmand %vm183_vm0, %vm187_vm2 }
  0x24   : > { %vm188_vm3 = vcmp.lt.s32.totalorder %v180_v4, %v186_v8 }
  0x25   : > { %vm190_vm5 = vmand %vm184_vm1, %vm188_vm3 }
  0x26   : > { %419 = vmatpush.msk.msra.mxu0 %vm190_vm5, %v582_v10  ;;  %433 = vmatpush.msk.msra.mxu1 %vm190_vm5, %v582_v10 }
  0x27   : > { %434 = vmatpush.msk.msra.mxu2 %vm190_vm5, %v582_v10  ;;  %435 = vmatpush.msk.msra.mxu3 %vm190_vm5, %v582_v10 }
  0x28   : > { %420 = vmatpush.msk.msra.mxu0 %vm661_vm4, %v582_v10  ;;  %436 = vmatpush.msk.msra.mxu1 %vm661_vm4, %v582_v10 }
  0x29   : > { %437 = vmatpush.msk.msra.mxu2 %vm661_vm4, %v582_v10  ;;  %421 = vmatmul.msk.f32.vlgmr.msra.gmra.mxu0 %vm195_vm6, %v167_v11 }
  0x2a   : > { %423 = vmatmul.msk.f32.vlgmr.msra.gmra.mxu1 %vm195_vm6, %v169_v12  ;;  %425 = vmatmul.msk.f32.vlgmr.msra.gmra.mxu2 %vm195_vm6, %v171_v13 }
  0x2b   : > { %438 = vmatpush.msk.msra.mxu3 %vm661_vm4, %v582_v10 }
  0x2c   : > { %427 = vmatmul.msk.f32.vlgmr.msra.gmra.mxu3 %vm195_vm6, %v173_v14 }
  0x31   : > { %422 = vmatmul.msk.f32.gmra.mxu0 %vm195_vm6, %v168_v15 }
  0x32   : > { %424 = vmatmul.msk.f32.gmra.mxu1 %vm195_vm6, %v170_v16  ;;  %426 = vmatmul.msk.f32.gmra.mxu2 %vm195_vm6, %v172_v17 }
  0x34   : > { %428 = vmatmul.msk.f32.gmra.mxu3 %vm195_vm6, %v174_v18 }
  0xa6   : > { %v237_v19 = vpop.f32.mrf.mxu0 }
  0xa7   : > { %v243_v20 = vpop.f32.mrf.mxu1  ;;  %269 = vrot.lane.b32.xlu0 %v237_v19, %s583_s6 }
  0xa8   : > { %273 = vrot.lane.b32.xlu1 %v243_v20, %s583_s6 }
  0xad   : > { %v249_v21 = vpop.f32.mrf.mxu2 }
  0xae   : > { %277 = vrot.lane.b32.xlu2 %v249_v21, %s583_s6  ;;  %v240_v22 = vpop.f32.mrf.mxu0 }
  0xaf   : > { %v246_v23 = vpop.f32.mrf.mxu1  ;;  %v255_v24 = vpop.f32.mrf.mxu3  ;;  %271 = vrot.lane.b32.xlu0 %v240_v22, %s583_s6 }
  0xb0   : > { %275 = vrot.lane.b32.xlu1 %v246_v23, %s583_s6 }
  0xb5   : > { %v252_v25 = vpop.f32.mrf.mxu2 }
  0xb6   : > { %279 = vrot.lane.b32.xlu2 %v252_v25, %s583_s6 }
  0xb7   : > { %v258_v26 = vpop.f32.mrf.mxu3  ;;  %281 = vrot.lane.b32.xlu0 %v255_v24, %s583_s6 }
  0xb8   : > { %283 = vrot.lane.b32.xlu1 %v258_v26, %s583_s6 }
 0x108   : > { %v278_v27 = vpop.permute.xlu2 %277 }
 0x109   : > { %v298_v28 = vsel %vm293_vm7, %v249_v21, %v278_v27 }
 0x10a   : > { %307 = vst.msk [vmem:[%s165_s16 + $0x20] sm:$0xff] %vm302_vm8, %v298_v28 }
 0x110   : > { %v280_v29 = vpop.permute.xlu2 %279 }
 0x111   : > { %v299_v30 = vsel %vm293_vm7, %v252_v25, %v280_v29 }
 0x112   : > { %308 = vst.msk [vmem:[%s165_s16 + $0x28] sm:$0xff] %vm302_vm8, %v299_v30 }
 0x119   : > { %v270_v31 = vpop.permute.xlu0 %269 }
 0x11a   : > { %v274_v32 = vpop.permute.xlu1 %273  ;;  %v294_v33 = vsel %vm293_vm7, %v237_v19, %v270_v31 }
 0x11b   : > { %v296_v34 = vsel %vm293_vm7, %v243_v20, %v274_v32  ;;  %303 = vst.msk [vmem:[%s165_s16] sm:$0xff] %vm302_vm8, %v294_v33 }
 0x11c   : > { %305 = vst.msk [vmem:[%s165_s16 + $0x10] sm:$0xff] %vm302_vm8, %v296_v34 }
 0x121   : > { %v272_v35 = vpop.permute.xlu0 %271 }
 0x122   : > { %v276_v36 = vpop.permute.xlu1 %275  ;;  %v295_v37 = vsel %vm293_vm7, %v240_v22, %v272_v35 }
 0x123   : > { %v297_v38 = vsel %vm293_vm7, %v246_v23, %v276_v36  ;;  %304 = vst.msk [vmem:[%s165_s16 + $0x8] sm:$0xff] %vm302_vm8, %v295_v37 }
 0x124   : > { %306 = vst.msk [vmem:[%s165_s16 + $0x18] sm:$0xff] %vm302_vm8, %v297_v38 }
 0x129   : > { %v282_v39 = vpop.permute.xlu0 %281 }
 0x12a   : > { %v284_v40 = vpop.permute.xlu1 %283  ;;  %v300_v41 = vsel %vm293_vm7, %v255_v24, %v282_v39 }
 0x12b   : > { %v301_v42 = vsel %vm293_vm7, %v258_v26, %v284_v40  ;;  %309 = vst.msk [vmem:[%s165_s16 + $0x30] sm:$0xff] %vm302_vm8, %v300_v41 }
 0x12c   : > { %310 = vst.msk [vmem:[%s165_s16 + $0x38] sm:$0xff] %vm302_vm8, %v301_v42 }
 0x12d PF: > { %s14_s11 = sadd.s32 1, %s578_s11   ;;  %s734_s6 = smov %s562_s7 }
 0x12e   : > { %p11_p0 = scmp.ge.s32.totalorder %s14_s11, 4   ;;  %s735_s7 = smov %s566_s8 }
 0x12f   : > { %s736_s8 = smov %s643_s18  ;;  %s737_s9 = smov %s574_s10 }
 0x130   : > { %s738_s10 = smov %s740_s13  ;;  %13 = sbr.rel (!%p11_p0) target bundleno = 4 (0x4), region = 64 }
 0x135   :  { %341 = vsyncpa [#allocation3], 1 }
 0x136   :  { %343 = vsyncpa [#allocation3 + $0x1], 1 }

</bundles_post_ra>
